<compile_context>
chip_gen: v7x
topology: tpu7x:2x2x1
jax: 0.10.0
libtpu: 0.0.40
codegen_flags: <defaults>
</compile_context>

<pallas_src>
import functools

import jax
import jax.numpy as jnp
from jax import lax
from jax.experimental import pallas as pl
from jax.experimental.pallas import tpu as pltpu


LANE = 128


def _round_up(n, m):
    return ((n + m - 1) // m) * m


def _pad_last(a, target):
    pad = target - a.shape[-1]
    if pad == 0:
        return a
    return jnp.pad(a, [(0, 0)] * (a.ndim - 1) + [(0, pad)])


# --------------------------------------------------------------------------
# Kernels
# --------------------------------------------------------------------------

def rnn_single_kernel(x_ref, h_ref, w1_ref, b12_ref, w2_ref, w3_ref, b3_ref,
                      out_ref, state_ref):
    """One fused step: relu(x@W1 + h@W2 + b12) -> fc3.  All lane-dense (padded)."""
    x = x_ref[...]                       # (B, 512)      f32
    h = h_ref[...]                       # (B, ND_PAD)   f32
    z = (jnp.dot(x.astype(w1_ref.dtype), w1_ref[...],
                 preferred_element_type=jnp.float32)
         + jnp.dot(h.astype(w2_ref.dtype), w2_ref[...],
                   preferred_element_type=jnp.float32)
         + b12_ref[...])                 # bias add in f32
    s = jnp.maximum(z, jnp.float32(0.0))
    state_ref[...] = s.astype(state_ref.dtype)
    out_ref[...] = (jnp.dot(s.astype(w3_ref.dtype), w3_ref[...],
                            preferred_element_type=jnp.float32)
                    + b3_ref[...]).astype(out_ref.dtype)


def fc1_gemm_kernel(x_ref, w1_ref, b12_ref, i_ref):
    """Hoisted fc1 over all timesteps: one big GEMM, bias fused (b1+b2)."""
    i_ref[...] = (jnp.dot(x_ref[...].astype(w1_ref.dtype), w1_ref[...],
                          preferred_element_type=jnp.float32)
                  + b12_ref[...]).astype(i_ref.dtype)


def rnn_recurrence_kernel(i_ref, h0_ref, w2_ref, s_ref, h_scratch, *, tt):
    """TT timesteps of the serial recurrence per grid step.

    h_t = relu(h_{t-1} @ W2 + I_t), with I_t = x_t @ W1 + b1 + b2 precomputed.
    The hidden state is carried across grid steps in a persistent VMEM scratch.
    Time axis MUST stay "arbitrary" (sequential) because of the carry.
    """
    c = pl.program_id(0)

    @pl.when(c == 0)
    def _():
        h_scratch[...] = h0_ref[...]

    def step(t, h):
        z = (jnp.dot(h.astype(w2_ref.dtype), w2_ref[...],
                     preferred_element_type=jnp.float32)
             + i_ref[t])
        s = jnp.maximum(z, jnp.float32(0.0))
        s_ref[t] = s.astype(s_ref.dtype)
        return s

    h_final = lax.fori_loop(0, tt, step, h_scratch[...], unroll=True)
    h_scratch[...] = h_final


# --------------------------------------------------------------------------
# Wrappers
# --------------------------------------------------------------------------

def prepare_params(params, weight_dtype=jnp.float32):
    """Pad to lane-dense shapes, pre-fuse b1+b2, optionally cast weights to bf16.

    Zero-padding keeps the math exact: padded state lanes stay 0 across steps
    (relu(0 + 0) = 0), so the real columns are untouched.
    """
    w1, b1, w2, b2, w3, b3 = params
    _, ndims = w1.shape
    out_dim = w3.shape[1]
    nd_pad = max(LANE, _round_up(ndims, LANE))
    out_pad = max(LANE, _round_up(out_dim, LANE))

    w1_p = _pad_last(w1, nd_pad).astype(weight_dtype)                    # (512, ND)
    w2_p = jnp.pad(w2, ((0, nd_pad - ndims),
                        (0, nd_pad - ndims))).astype(weight_dtype)       # (ND, ND)
    # Lane-padded W3/b3 for the fused single-step kernel.
    w3_lp = jnp.pad(w3, ((0, nd_pad - ndims),
                         (0, out_pad - out_dim))).astype(weight_dtype)   # (ND, OUT_PAD)
    b3_lp = _pad_last(b3, out_pad).astype(jnp.float32)                   # (1, OUT_PAD)
    # Row-padded-only W3/b3 for the hoisted (XLA) fc3 in the sequence path.
    w3_rp = jnp.pad(w3, ((0, nd_pad - ndims), (0, 0))).astype(jnp.float32)  # (ND, out)
    b12_p = _pad_last(b1 + b2, nd_pad).astype(jnp.float32)               # (1, ND)

    return {
        "w1": w1_p, "b12": b12_p, "w2": w2_p,
        "w3_pad": w3_lp, "b3_pad": b3_lp,
        "w3": w3_rp, "b3": b3.astype(jnp.float32),
        "ndims": ndims, "out_dim": out_dim, "nd_pad": nd_pad, "out_pad": out_pad,
    }


def rnn_single_forward_padded(x, state_p, prepared):
    """Fused single step on padded buffers (no per-call pad/slice).

    x: (B, 512), state_p: (B, ND_PAD).
    Returns (out_p (B, OUT_PAD), new_state_p (B, ND_PAD)).
    """
    B = x.shape[0]
    nd_pad = prepared["nd_pad"]
    out_pad = prepared["out_pad"]

    vmem = pl.BlockSpec(memory_space=pltpu.MemorySpace.VMEM)
    out_p, new_state_p = pl.pallas_call(
        rnn_single_kernel,
        out_shape=(jax.ShapeDtypeStruct((B, out_pad), jnp.float32),
                   jax.ShapeDtypeStruct((B, nd_pad), jnp.float32)),
        in_specs=[vmem] * 7,
        out_specs=(vmem, vmem),
    )(x, state_p, prepared["w1"], prepared["b12"], prepared["w2"],
      prepared["w3_pad"], prepared["b3_pad"])
    return out_p, new_state_p


def rnn_single_forward(x, state, prepared):
    """Module-semantic single step. x: (B,512), state: (B,ndims)."""
    ndims = prepared["ndims"]
    out_dim = prepared["out_dim"]
    state_p = _pad_last(state.astype(jnp.float32), prepared["nd_pad"])
    out_p, new_state_p = rnn_single_forward_padded(x, state_p, prepared)
    return out_p[:, :out_dim], new_state_p[:, :ndims]


def fc1_forward(xs_flat, w1_p, b12_p, tm=256):
    """Hoisted fc1 GEMM over all timesteps: (M, 512) @ (512, ND) + b12.

    M-tile grid marked "parallel" so it shards across TensorCores on v7x.
    """
    M, K = xs_flat.shape
    nd_pad = w1_p.shape[1]
    tm = min(tm, _round_up(M, 8))
    M_pad = _round_up(M, tm)
    x_p = jnp.pad(xs_flat, ((0, M_pad - M), (0, 0)))

    out = pl.pallas_call(
        fc1_gemm_kernel,
        out_shape=jax.ShapeDtypeStruct((M_pad, nd_pad), jnp.float32),
        grid=(M_pad // tm,),
        in_specs=[
            pl.BlockSpec((tm, K), lambda m: (m, 0)),
            pl.BlockSpec((K, nd_pad), lambda m: (0, 0)),
            pl.BlockSpec((1, nd_pad), lambda m: (0, 0)),
        ],
        out_specs=pl.BlockSpec((tm, nd_pad), lambda m: (m, 0)),
        compiler_params=pltpu.CompilerParams(dimension_semantics=("parallel",)),
    )(x_p, w1_p, b12_p)
    return out[:M]


def rnn_sequence_forward(xs, state0, prepared, tt=32):
    """T timesteps with fc1/fc3 hoisted out of the serial recurrence.

    xs: (T, B, 512), state0: (B, ndims).
    Returns (outputs (T, B, out_dim), final_state (B, ndims)).
    """
    T, B, K = xs.shape
    ndims = prepared["ndims"]
    out_dim = prepared["out_dim"]
    nd_pad = prepared["nd_pad"]

    # ---- hoisted fc1: one big MXU-friendly GEMM over all timesteps ----
    i_seq = fc1_forward(xs.reshape(T * B, K),
                        prepared["w1"], prepared["b12"]).reshape(T, B, nd_pad)

    # ---- time-chunked serial recurrence in Pallas ----
    tt = max(1, min(tt, T))
    T_pad = _round_up(T, tt)
    if T_pad != T:
        # Padded trailing steps only write rows we slice off; the final real
        # state is read back from states[T-1], so the corrupted carry after
        # step T-1 is never used.
        i_seq = jnp.pad(i_seq, ((0, T_pad - T), (0, 0), (0, 0)))

    h0_p = _pad_last(state0.astype(jnp.float32), nd_pad)

    states_p = pl.pallas_call(
        functools.partial(rnn_recurrence_kernel, tt=tt),
        out_shape=jax.ShapeDtypeStruct((T_pad, B, nd_pad), jnp.float32),
        grid=(T_pad // tt,),
        in_specs=[
            pl.BlockSpec((tt, B, nd_pad), lambda c: (c, 0, 0)),   # I chunk streamed
            pl.BlockSpec((B, nd_pad), lambda c: (0, 0)),          # h0 resident
            pl.BlockSpec((nd_pad, nd_pad), lambda c: (0, 0)),     # W2 resident
        ],
        out_specs=pl.BlockSpec((tt, B, nd_pad), lambda c: (c, 0, 0)),
        scratch_shapes=[pltpu.VMEM((B, nd_pad), jnp.float32)],    # carried hidden state
        compiler_params=pltpu.CompilerParams(
            # time axis carries state -> must stay sequential
            dimension_semantics=("arbitrary",),
        ),
    )(i_seq, h0_p, prepared["w2"])

    states_p = states_p[:T]                                        # (T, B, ND_PAD)

    # ---- hoisted fc3: one small GEMM in XLA; out_dim=2 needs no lane padding ----
    outs = (states_p.reshape(T * B, nd_pad) @ prepared["w3"]
            + prepared["b3"]).reshape(T, B, out_dim)
    final_state = states_p[T - 1, :, :ndims]
    return outs, final_state


# --------------------------------------------------------------------------
# Init + reference
# --------------------------------------------------------------------------

def init_params(key, ndims):
    """PyTorch nn.Linear default init (U[-1/sqrt(fan_in), +]); weights as (in, out)."""
    def linear(k, fan_in, fan_out):
        kw, kb = jax.random.split(k)
        bound = 1.0 / jnp.sqrt(jnp.float32(fan_in))
        w = jax.random.uniform(kw, (fan_in, fan_out), jnp.float32, -bound, bound)
        b = jax.random.uniform(kb, (1, fan_out), jnp.float32, -bound, bound)
        return w, b

    k1, k2, k3 = jax.random.split(key, 3)
    w1, b1 = linear(k1, 512, ndims)
    w2, b2 = linear(k2, ndims, ndims)
    w3, b3 = linear(k3, ndims, 2)
    return (w1, b1, w2, b2, w3, b3)


def reference_forward(x, state, params):
    w1, b1, w2, b2, w3, b3 = params
    i = x @ w1 + b1
    s = state @ w2 + b2
    s = jnp.maximum(s + i, 0.0)
    o = s @ w3 + b3
    return o, s


# --------------------------------------------------------------------------
# Demo / correctness check
# --------------------------------------------------------------------------

if __name__ == "__main__":
    ndims = 32
    batch = 2
    seq_len = 8

    key = jax.random.PRNGKey(0)
    kp, kx, kh, ks = jax.random.split(key, 4)

    params = init_params(kp, ndims)
    # weight_dtype=jnp.bfloat16 on v5e/v6e/v7x if accuracy allows (f32 accumulation kept);
    # the demo keeps f32 so the 1e-4 reference check is dtype-exact.
    prepared = prepare_params(params, weight_dtype=jnp.float32)

    x = jax.random.normal(kx, (batch, 512), jnp.float32)
    state = jax.random.normal(kh, (batch, ndims), jnp.float32)

    # ---- single-step (exact module forward) ----
    out, new_state = rnn_single_forward(x, state, prepared)
    out = jax.block_until_ready(out)
    new_state = jax.block_until_ready(new_state)

    ref_out, ref_state = reference_forward(x, state, params)
    assert out.shape == (batch, 2) and new_state.shape == (batch, ndims)
    assert jnp.allclose(out, ref_out, atol=1e-4, rtol=1e-4)
    assert jnp.allclose(new_state, ref_state, atol=1e-4, rtol=1e-4)

    # ---- sequence path: fc1/fc3 hoisted, chunked serial recurrence ----
    xs = jax.random.normal(ks, (seq_len, batch, 512), jnp.float32)
    outs, final_state = rnn_sequence_forward(xs, state, prepared, tt=32)
    outs = jax.block_until_ready(outs)
    final_state = jax.block_until_ready(final_state)

    h = state
    ref_outs = []
    for t in range(seq_len):
        o_t, h = reference_forward(xs[t], h, params)
        ref_outs.append(o_t)
    ref_outs = jnp.stack(ref_outs, axis=0)

    assert outs.shape == (seq_len, batch, 2) and final_state.shape == (batch, ndims)
    assert jnp.allclose(outs, ref_outs, atol=1e-4, rtol=1e-4)
    assert jnp.allclose(final_state, h, atol=1e-4, rtol=1e-4)

    print("KERNEL_OK")
</pallas_src>

<mosaic_0001>
module attributes {stable_mosaic.version = 11 : i64} {
  func.func @rnn_single_kernel(%arg0: memref<2x512xf32, #tpu.memory_space<vmem>>, %arg1: memref<2x128xf32, #tpu.memory_space<vmem>>, %arg2: memref<512x128xf32, #tpu.memory_space<vmem>>, %arg3: memref<1x128xf32, #tpu.memory_space<vmem>>, %arg4: memref<128x128xf32, #tpu.memory_space<vmem>>, %arg5: memref<128x128xf32, #tpu.memory_space<vmem>>, %arg6: memref<1x128xf32, #tpu.memory_space<vmem>>, %arg7: memref<2x128xf32, #tpu.memory_space<vmem>>, %arg8: memref<2x128xf32, #tpu.memory_space<vmem>>) attributes {dimension_semantics = [], scalar_prefetch = 0 : i64, scratch_operands = 0 : i64, tpu.core_type = #tpu.core_type<tc>} {
    %c0 = arith.constant 0 : index
    %c0_0 = arith.constant 0 : index
    %0 = vector.load %arg0[%c0, %c0_0] : memref<2x512xf32, #tpu.memory_space<vmem>>, vector<2x512xf32>
    %c0_1 = arith.constant 0 : index
    %c0_2 = arith.constant 0 : index
    %1 = vector.load %arg1[%c0_1, %c0_2] : memref<2x128xf32, #tpu.memory_space<vmem>>, vector<2x128xf32>
    %c0_3 = arith.constant 0 : index
    %c0_4 = arith.constant 0 : index
    %2 = vector.load %arg2[%c0_3, %c0_4] : memref<512x128xf32, #tpu.memory_space<vmem>>, vector<512x128xf32>
    %cst = arith.constant dense<0.000000e+00> : vector<2x128xf32>
    %3 = tpu.matmul %0, %2, %cst {dimension_numbers = #tpu.dot_dimension_numbers<[1], [0], [0], [1], [0, 0, 1, 1], [], []>} : vector<2x512xf32>, vector<512x128xf32>, vector<2x128xf32> -> vector<2x128xf32>
    %c0_5 = arith.constant 0 : index
    %c0_6 = arith.constant 0 : index
    %4 = vector.load %arg4[%c0_5, %c0_6] : memref<128x128xf32, #tpu.memory_space<vmem>>, vector<128x128xf32>
    %cst_7 = arith.constant dense<0.000000e+00> : vector<2x128xf32>
    %5 = tpu.matmul %1, %4, %cst_7 {dimension_numbers = #tpu.dot_dimension_numbers<[1], [0], [0], [1], [0, 0, 1, 1], [], []>} : vector<2x128xf32>, vector<128x128xf32>, vector<2x128xf32> -> vector<2x128xf32>
    %6 = arith.addf %3, %5 : vector<2x128xf32>
    %c0_8 = arith.constant 0 : index
    %c0_9 = arith.constant 0 : index
    %7 = vector.load %arg3[%c0_8, %c0_9] : memref<1x128xf32, #tpu.memory_space<vmem>>, vector<1x128xf32>
    %8 = vector.broadcast %7 : vector<1x128xf32> to vector<2x128xf32>
    %9 = arith.addf %6, %8 : vector<2x128xf32>
    %cst_10 = arith.constant 0.000000e+00 : f32
    %10 = vector.broadcast %cst_10 : f32 to vector<2x128xf32>
    %11 = arith.maximumf %9, %10 : vector<2x128xf32>
    %c0_11 = arith.constant 0 : index
    %c0_12 = arith.constant 0 : index
    %12 = vector.load %arg8[%c0_11, %c0_12] : memref<2x128xf32, #tpu.memory_space<vmem>>, vector<2x128xf32>
    tpu.vector_store %arg8[%c0_11, %c0_12], %11 {strides = array<i32>} : memref<2x128xf32, #tpu.memory_space<vmem>>, vector<2x128xf32>,
    %c0_13 = arith.constant 0 : index
    %c0_14 = arith.constant 0 : index
    %13 = vector.load %arg5[%c0_13, %c0_14] : memref<128x128xf32, #tpu.memory_space<vmem>>, vector<128x128xf32>
    %cst_15 = arith.constant dense<0.000000e+00> : vector<2x128xf32>
    %14 = tpu.matmul %11, %13, %cst_15 {dimension_numbers = #tpu.dot_dimension_numbers<[1], [0], [0], [1], [0, 0, 1, 1], [], []>} : vector<2x128xf32>, vector<128x128xf32>, vector<2x128xf32> -> vector<2x128xf32>
    %c0_16 = arith.constant 0 : index
    %c0_17 = arith.constant 0 : index
    %15 = vector.load %arg6[%c0_16, %c0_17] : memref<1x128xf32, #tpu.memory_space<vmem>>, vector<1x128xf32>
    %16 = vector.broadcast %15 : vector<1x128xf32> to vector<2x128xf32>
    %17 = arith.addf %14, %16 : vector<2x128xf32>
    %c0_18 = arith.constant 0 : index
    %c0_19 = arith.constant 0 : index
    %18 = vector.load %arg7[%c0_18, %c0_19] : memref<2x128xf32, #tpu.memory_space<vmem>>, vector<2x128xf32>
    tpu.vector_store %arg7[%c0_18, %c0_19], %17 {strides = array<i32>} : memref<2x128xf32, #tpu.memory_space<vmem>>, vector<2x128xf32>,
    return
  }
}

</mosaic_0001>

<bundles_post_ra>
// kernel: tpu_custom_call.1
= control target key start
LH: loop header
LB: loop body
LE: loop exit
PB: predicated region body
PF: predicated region fallthrough
CT: control target
= control target key end

     0   :  { %14 = vsyncpa [#allocation3], 0  ;;  %s1152_s0 = inlined_call_operand.hbm [shape: f32[2,512], index: 0, kind: input, shape index: {}]   ;;  %s1153_s1 = inlined_call_operand.vmem [shape: f32[2,128], index: 1, kind: input, shape index: {}]   ;;  %s1154_s2 = inlined_call_operand.hbm [shape: f32[512,128], index: 2, kind: input, shape index: {}]   ;;  %s1155_s3 = inlined_call_operand.vmem [shape: f32[1,128], index: 3, kind: input, shape index: {}]   ;;  %s1156_s4 = inlined_call_operand.hbm [shape: f32[128,128], index: 4, kind: input, shape index: {}]   ;;  %s1157_s5 = inlined_call_operand.hbm [shape: f32[128,128], index: 5, kind: input, shape index: {}]   ;;  %s1158_s6 = inlined_call_operand.vmem [shape: f32[1,128], index: 6, kind: input, shape index: {}]   ;;  %s1159_s7 = inlined_call_operand.hbm [shape: f32[2,128], index: 7, kind: output, shape index: {0}]   ;;  %s1160_s8 = inlined_call_operand.hbm [shape: f32[2,128], index: 8, kind: output, shape index: {1}]  }
   0x1   :  { %15 = vsyncpa [#allocation6], 0 }
   0x2   :  { %16 = vsyncpa [#allocation9], 0 }
   0x3   :  { %17 = vsyncpa [#allocation4], 0 }
   0x4   :  { %18 = vsyncpa [#allocation12], 0  ;;  %s975_s27 = smov [#allocation5]   ;;  %s833_s9 = scalar_lea.hbm %s1154_s2, 8192 }
   0x5   :  { %s36_s28 = sshll.u32 %s975_s27, 4  ;;  %p834_p0 = scmp.ne.s32.totalorder %s1154_s2, %s833_s9  ;;  %s37_s28 = int_to_ptr.vmem [resolvable:$true] %s36_s28 }
   0x6   :  { %p837_p1 = scmp.lt.u32.totalorder %s833_s9, %s1154_s2 }
   0x8   :  { %p839_p2 = pnand %p837_p1, %p834_p0 }
   0xa   :  { %842 = shalt.err (!%p839_p2)
}
   0xb   :  { %s843_s14 = scalar_lea.vmem %s37_s28, 8192  ;;  %p848_p4 = scmp.lt.s32.totalorder %s37_s28, %s37_s28 }
   0xc   :  { %p844_p3 = scmp.ne.s32.totalorder %s37_s28, %s843_s14  ;;  %p849_p5 = scmp.lt.s32.totalorder %s843_s14, %s843_s14 }
   0xe   :  { %p850_p6 = por %p849_p5, %p848_p4 }
  0x10   :  { %p851_p7 = pnand %p850_p6, %p844_p3 }
  0x12   :  { %854 = shalt.err (!%p851_p7)
}
  0x13   :  { %s976_s15 = smov 128   ;;  %s977_s16 = smov 8  }
  0x14   :  { %42 = dma.hbm_to_vmem [thread:$0]  %s1154_s2, 8192, %s37_s28, [#allocation6], %s976_s15, %s976_s15, %s977_s16  }
  0x15   :  { %s978_s19 = smov [#allocation2]   ;;  %s979_s21 = smov [#allocation7]  }
  0x16   :  { %s25_s20 = sshll.u32 %s978_s19, 4  ;;  %s50_s22 = sshll.u32 %s979_s21, 4  ;;  %s26_s20 = int_to_ptr.vmem [resolvable:$true] %s25_s20  ;;  %s51_s22 = int_to_ptr.vmem [resolvable:$true] %s50_s22 }
  0x17   :  { %s855_s25 = scalar_lea.hbm %s1152_s0, 128 }
  0x18   :  { %p856_p8 = scmp.ne.s32.totalorder %s1152_s0, %s855_s25  ;;  %p859_p9 = scmp.lt.u32.totalorder %s855_s25, %s1152_s0 }
  0x1a   :  { %p861_p10 = pnand %p859_p9, %p856_p8 }
  0x1c   :  { %864 = shalt.err (!%p861_p10)
}
  0x1d   :  { %s865_s2 = scalar_lea.vmem %s26_s20, 128  ;;  %p870_p12 = scmp.lt.s32.totalorder %s26_s20, %s26_s20 }
  0x1e   :  { %p866_p11 = scmp.ne.s32.totalorder %s26_s20, %s865_s2  ;;  %p871_p13 = scmp.lt.s32.totalorder %s865_s2, %s865_s2 }
  0x20   :  { %p872_p0 = por %p871_p13, %p870_p12 }
  0x22   :  { %p873_p1 = pnand %p872_p0, %p866_p11 }
  0x24   :  { %876 = shalt.err (!%p873_p1)
}
  0x25   :  { %28 = dma.hbm_to_vmem [thread:$0]  %s1152_s0, 128, %s26_s20, [#allocation3]  }
  0x26   :  { %s877_s12 = scalar_lea.hbm %s1156_s4, 2048 }
  0x27   :  { %p878_p2 = scmp.ne.s32.totalorder %s1156_s4, %s877_s12  ;;  %p881_p3 = scmp.lt.u32.totalorder %s877_s12, %s1156_s4 }
  0x29   :  { %p883_p4 = pnand %p881_p3, %p878_p2 }
  0x2b   :  { %886 = shalt.err (!%p883_p4)
}
  0x2c   :  { %s887_s19 = scalar_lea.vmem %s51_s22, 2048  ;;  %p892_p6 = scmp.lt.s32.totalorder %s51_s22, %s51_s22 }
  0x2d   :  { %p888_p5 = scmp.ne.s32.totalorder %s51_s22, %s887_s19  ;;  %p893_p7 = scmp.lt.s32.totalorder %s887_s19, %s887_s19 }
  0x2f   :  { %p894_p8 = por %p893_p7, %p892_p6 }
  0x31   :  { %p895_p9 = pnand %p894_p8, %p888_p5 }
  0x33   :  { %898 = shalt.err (!%p895_p9)
}
  0x34   :  { %56 = dma.hbm_to_vmem [thread:$0]  %s1156_s4, 2048, %s51_s22, [#allocation6], %s976_s15, %s976_s15, %s977_s16  }
  0x35   :  { %s980_s21 = smov [#allocation8]   ;;  %s899_s26 = scalar_lea.hbm %s1157_s5, 2048 }
  0x36   :  { %s62_s23 = sshll.u32 %s980_s21, 4  ;;  %p900_p10 = scmp.ne.s32.totalorder %s1157_s5, %s899_s26  ;;  %s63_s23 = int_to_ptr.vmem [resolvable:$true] %s62_s23 }
  0x37   :  { %p903_p11 = scmp.lt.u32.totalorder %s899_s26, %s1157_s5 }
  0x39   :  { %p905_p12 = pnand %p903_p11, %p900_p10 }
  0x3b   :  { %908 = shalt.err (!%p905_p12)
}
  0x3c   :  { %s909_s28 = scalar_lea.vmem %s63_s23, 2048  ;;  %p914_p0 = scmp.lt.s32.totalorder %s63_s23, %s63_s23 }
  0x3d   :  { %p910_p13 = scmp.ne.s32.totalorder %s63_s23, %s909_s28  ;;  %p915_p1 = scmp.lt.s32.totalorder %s909_s28, %s909_s28 }
  0x3f   :  { %p916_p2 = por %p915_p1, %p914_p0 }
  0x41   :  { %p917_p3 = pnand %p916_p2, %p910_p13 }
  0x43   :  { %920 = shalt.err (!%p917_p3)
}
  0x44   :  { %68 = dma.hbm_to_vmem [thread:$0]  %s1157_s5, 2048, %s63_s23, [#allocation9], %s976_s15, %s976_s15, %s977_s16  }
  0x45   :  { %965 = dma.done.wait [#allocation3], 128  }
  0x46   :  { %966 = vsyncadd [#allocation3], 4294967168 }
  0x47   :  { %967 = dma.done.wait [#allocation6], 10240  }
  0x48   :  { %968 = vsyncadd [#allocation6], 4294957056 }
  0x49   :  { %969 = dma.done.wait [#allocation9], 2048  }
  0x4a   :  { %970 = vsyncadd [#allocation9], 4294965248  ;;  %v981_v0 = vmov 0.0|0.0   ;;  %vm982_vm0 = vmmov 0   ;;  %v983_v1 = vmov 0.0   ;;  %v149_v2 = vld [vmem:[#allocation7] sm:$0xff]  ;;  %v240_v26 = vlaneseq }
  0x4b   :  { %708 = vmatprep.subr.bf16.mxu0 %v981_v0  ;;  %670 = vmatprep.mubr.msk.f32.mxu0 %vm982_vm0, %v983_v1  ;;  %v150_v3 = vld [vmem:[#allocation7 + $0x8] sm:$0xff]  ;;  %v101_v4 = vld [vmem:[#allocation5 + $0x80] sm:$0xff]  ;;  %v151_v11 = vld [vmem:[#allocation7 + $0x10] sm:$0xff]  ;;  %v984_v24 = vmov 1983009808   ;;  %s985_s9 = smov [#allocation11]  }
  0x4c   :  { %v709_v5 = vpack.c.bf16 %v150_v3, %v149_v2  ;;  %v102_v6 = vld [vmem:[#allocation5 + $0x88] sm:$0xff]  ;;  %v85_v7 = vld [vmem:[#allocation5] sm:$0xff]  ;;  %v152_v12 = vld [vmem:[#allocation7 + $0x18] sm:$0xff]  ;;  %v238_v25 = vunpack.c.l.s4 %v984_v24  ;;  %v241_v37 = vshrl.u32 %v240_v26, 7  ;;  %s517_s10 = sshll.u32 %s985_s9, 4  ;;  %s518_s10 = int_to_ptr.vmem [resolvable:$true] %s517_s10 }
  0x4d   :  { %v86_v8 = vld [vmem:[#allocation5 + $0x8] sm:$0xff]  ;;  %v732_v9 = vpack.c.bf16 %v102_v6, %v101_v4  ;;  %v103_v13 = vld [vmem:[#allocation5 + $0x90] sm:$0xff]  ;;  %v712_v14 = vpack.c.bf16 %v152_v12, %v151_v11  ;;  %v104_v15 = vld [vmem:[#allocation5 + $0x98] sm:$0xff]  ;;  %s921_s11 = scalar_lea.vmem %s518_s10, 32  ;;  %p926_p5 = scmp.lt.s32.totalorder %s518_s10, %s518_s10 }
  0x4e   :  { %v734_v10 = vpack.c.bf16 %v86_v8, %v85_v7  ;;  %710 = vmatpush3.bf16.msra.mxu0 %v709_v5  ;;  %v87_v16 = vld [vmem:[#allocation5 + $0x10] sm:$0xff]  ;;  %v88_v17 = vld [vmem:[#allocation5 + $0x18] sm:$0xff]  ;;  %v736_v18 = vpack.c.bf16 %v104_v15, %v103_v13  ;;  %v153_v19 = vld [vmem:[#allocation7 + $0x20] sm:$0xff]  ;;  %v239_v36 = vunpack.c.0.s8 %v238_v25  ;;  %p922_p4 = scmp.ne.s32.totalorder %s518_s10, %s921_s11  ;;  %p927_p6 = scmp.lt.s32.totalorder %s921_s11, %s921_s11 }
  0x4f   :  { %733 = vmatprep.subr.bf16.mxu1 %v732_v9  ;;  %711 = vmatprep.subr.bf16.mxu0 %v981_v0  ;;  %v154_v20 = vld [vmem:[#allocation7 + $0x28] sm:$0xff]  ;;  %v105_v21 = vld [vmem:[#allocation5 + $0xa0] sm:$0xff]  ;;  %v738_v22 = vpack.c.bf16 %v88_v17, %v87_v16  ;;  %v107_v31 = vld [vmem:[#allocation5 + $0xb0] sm:$0xff] }
  0x50   :  { %735 = vmatpush3.bf16.msra.mxu1 %v734_v10  ;;  %v106_v23 = vld [vmem:[#allocation5 + $0xa8] sm:$0xff]  ;;  %v89_v28 = vld [vmem:[#allocation5 + $0x20] sm:$0xff]  ;;  %v715_v30 = vpack.c.bf16 %v154_v20, %v153_v19  ;;  %v108_v32 = vld [vmem:[#allocation5 + $0xb8] sm:$0xff]  ;;  %v242_v47 = vsub.s32 %v239_v36, %v241_v37  ;;  %p928_p7 = por %p927_p6, %p926_p5 }
  0x51   :  { %737 = vmatprep.subr.bf16.mxu1 %v736_v18  ;;  %v740_v27 = vpack.c.bf16 %v106_v23, %v105_v21  ;;  %v90_v29 = vld [vmem:[#allocation5 + $0x28] sm:$0xff]  ;;  %v155_v33 = vld [vmem:[#allocation7 + $0x30] sm:$0xff]  ;;  %v156_v34 = vld [vmem:[#allocation7 + $0x38] sm:$0xff]  ;;  %v744_v38 = vpack.c.bf16 %v108_v32, %v107_v31 }
  0x52   :  { %713 = vmatpush3.bf16.msra.mxu0 %v712_v14  ;;  %v742_v35 = vpack.c.bf16 %v90_v29, %v89_v28  ;;  %v91_v39 = vld [vmem:[#allocation5 + $0x30] sm:$0xff]  ;;  %v92_v40 = vld [vmem:[#allocation5 + $0x38] sm:$0xff]  ;;  %v718_v41 = vpack.c.bf16 %v156_v34, %v155_v33  ;;  %v109_v42 = vld [vmem:[#allocation5 + $0xc0] sm:$0xff]  ;;  %p929_p8 = pnand %p928_p7, %p922_p4 }
  0x53   :  { %714 = vmatprep.subr.bf16.mxu0 %v981_v0  ;;  %v110_v43 = vld [vmem:[#allocation5 + $0xc8] sm:$0xff]  ;;  %v157_v44 = vld [vmem:[#allocation7 + $0x40] sm:$0xff]  ;;  %v746_v46 = vpack.c.bf16 %v92_v40, %v91_v39  ;;  %v111_v52 = vld [vmem:[#allocation5 + $0xd0] sm:$0xff] }
  0x54   :  { %739 = vmatpush3.bf16.msra.mxu1 %v738_v22  ;;  %v158_v45 = vld [vmem:[#allocation7 + $0x48] sm:$0xff]  ;;  %v748_v48 = vpack.c.bf16 %v110_v43, %v109_v42  ;;  %v93_v49 = vld [vmem:[#allocation5 + $0x40] sm:$0xff]  ;;  %v112_v53 = vld [vmem:[#allocation5 + $0xd8] sm:$0xff] }
  0x55   :  { %741 = vmatprep.subr.bf16.mxu1 %v740_v27  ;;  %v94_v50 = vld [vmem:[#allocation5 + $0x48] sm:$0xff]  ;;  %v721_v51 = vpack.c.bf16 %v158_v45, %v157_v44  ;;  %v159_v54 = vld [vmem:[#allocation7 + $0x50] sm:$0xff]  ;;  %v160_v55 = vld [vmem:[#allocation7 + $0x58] sm:$0xff]  ;;  %v752_v59 = vpack.c.bf16 %v112_v53, %v111_v52 }
  0x56   :  { %716 = vmatpush3.bf16.msra.mxu0 %v715_v30  ;;  %v83_v56 = vld [vmem:[#allocation2] sm:$0xff]  ;;  %v750_v57 = vpack.c.bf16 %v94_v50, %v93_v49  ;;  %v95_v60 = vld [vmem:[#allocation5 + $0x50] sm:$0xff]  ;;  %v724_v62 = vpack.c.bf16 %v160_v55, %v159_v54  ;;  %v113_v63 = vld [vmem:[#allocation5 + $0xe0] sm:$0xff] }
  0x57   :  { %717 = vmatprep.subr.bf16.mxu0 %v981_v0  ;;  %v1096_v58 = vrot.slane %v83_v56, %v242_v47  ;;  %v96_v61 = vld [vmem:[#allocation5 + $0x58] sm:$0xff]  ;;  %v114_v2 = vld [vmem:[#allocation5 + $0xe8] sm:$0xff]  ;;  %v161_v4 = vld [vmem:[#allocation7 + $0x60] sm:$0xff]  ;;  %v236_v13 = vcombine.high %v83_v56, %v83_v56 }
  0x58   :  { %743 = vmatpush3.bf16.msra.mxu1 %v742_v35  ;;  %v162_v5 = vld [vmem:[#allocation7 + $0x68] sm:$0xff]  ;;  %v754_v6 = vpack.c.bf16 %v96_v61, %v95_v60  ;;  %v756_v7 = vpack.c.bf16 %v114_v2, %v113_v63  ;;  %v97_v8 = vld [vmem:[#allocation5 + $0x60] sm:$0xff]  ;;  %v115_v11 = vld [vmem:[#allocation5 + $0xf0] sm:$0xff] }
  0x59   :  { %745 = vmatprep.subr.bf16.mxu1 %v744_v38  ;;  %v251_v3 = vcombine.high %v1096_v58, %v1096_v58  ;;  %v98_v9 = vld [vmem:[#allocation5 + $0x68] sm:$0xff]  ;;  %v727_v10 = vpack.c.bf16 %v162_v5, %v161_v4  ;;  %v116_v12 = vld [vmem:[#allocation5 + $0xf8] sm:$0xff]  ;;  %v163_v14 = vld [vmem:[#allocation7 + $0x70] sm:$0xff]  ;;  %v1102_v23 = vrot.slane %v236_v13, %v242_v47 }
  0x5a   :  { %719 = vmatpush3.bf16.msra.mxu0 %v718_v41  ;;  %v164_v15 = vld [vmem:[#allocation7 + $0x78] sm:$0xff]  ;;  %v758_v16 = vpack.c.bf16 %v98_v9, %v97_v8  ;;  %v133_v17 = vld [vmem:[#allocation5 + $0x180] sm:$0xff]  ;;  %v134_v18 = vld [vmem:[#allocation5 + $0x188] sm:$0xff]  ;;  %v760_v19 = vpack.c.bf16 %v116_v12, %v115_v11 }
  0x5b   :  { %720 = vmatprep.subr.bf16.mxu0 %v981_v0  ;;  %321 = vmatprep.mubr.f32.mxu1 %v251_v3  ;;  %v99_v20 = vld [vmem:[#allocation5 + $0x70] sm:$0xff]  ;;  %v100_v21 = vld [vmem:[#allocation5 + $0x78] sm:$0xff]  ;;  %v730_v22 = vpack.c.bf16 %v164_v15, %v163_v14  ;;  %v764_v24 = vpack.c.bf16 %v134_v18, %v133_v17  ;;  %v117_v25 = vld [vmem:[#allocation5 + $0x100] sm:$0xff]  ;;  %v252_v32 = vcombine.high %v1102_v23, %v1102_v23 }
  0x5c   :  { %747 = vmatpush3.bf16.msra.mxu1 %v746_v46  ;;  %v118_v26 = vld [vmem:[#allocation5 + $0x108] sm:$0xff]  ;;  %v762_v27 = vpack.c.bf16 %v100_v21, %v99_v20  ;;  %v135_v28 = vld [vmem:[#allocation5 + $0x190] sm:$0xff]  ;;  %v136_v29 = vld [vmem:[#allocation5 + $0x198] sm:$0xff] }
  0x5d   :  { %749 = vmatprep.subr.bf16.mxu1 %v748_v48  ;;  %v84_v30 = vld [vmem:[%s1153_s1] sm:$0x3]  ;;  %v766_v31 = vpack.c.bf16 %v118_v26, %v117_v25  ;;  %v768_v33 = vpack.c.bf16 %v136_v29, %v135_v28  ;;  %v119_v34 = vld [vmem:[#allocation5 + $0x110] sm:$0xff]  ;;  %v137_v36 = vld [vmem:[#allocation5 + $0x1a0] sm:$0xff] }
  0x5e   :  { %722 = vmatpush3.bf16.msra.mxu0 %v721_v51  ;;  %v120_v35 = vld [vmem:[#allocation5 + $0x118] sm:$0xff]  ;;  %v138_v37 = vld [vmem:[#allocation5 + $0x1a8] sm:$0xff]  ;;  %v121_v40 = vld [vmem:[#allocation5 + $0x120] sm:$0xff] }
  0x5f   :  { %723 = vmatprep.subr.bf16.mxu0 %v981_v0  ;;  %v770_v38 = vpack.c.bf16 %v120_v35, %v119_v34  ;;  %v772_v39 = vpack.c.bf16 %v138_v37, %v137_v36  ;;  %v122_v41 = vld [vmem:[#allocation5 + $0x128] sm:$0xff]  ;;  %v139_v42 = vld [vmem:[#allocation5 + $0x1b0] sm:$0xff]  ;;  %v140_v43 = vld [vmem:[#allocation5 + $0x1b8] sm:$0xff] }
  0x60   :  { %751 = vmatpush3.bf16.msra.mxu1 %v750_v57  ;;  %v774_v44 = vpack.c.bf16 %v122_v41, %v121_v40  ;;  %v776_v45 = vpack.c.bf16 %v140_v43, %v139_v42  ;;  %v123_v46 = vld [vmem:[#allocation5 + $0x130] sm:$0xff]  ;;  %v124_v47 = vld [vmem:[#allocation5 + $0x138] sm:$0xff]  ;;  %v141_v48 = vld [vmem:[#allocation5 + $0x1c0] sm:$0xff] }
  0x61   :  { %753 = vmatprep.subr.bf16.mxu1 %v752_v59  ;;  %v142_v49 = vld [vmem:[#allocation5 + $0x1c8] sm:$0xff]  ;;  %v778_v50 = vpack.c.bf16 %v124_v47, %v123_v46  ;;  %v125_v52 = vld [vmem:[#allocation5 + $0x140] sm:$0xff]  ;;  %v143_v54 = vld [vmem:[#allocation5 + $0x1d0] sm:$0xff] }
  0x62   :  { %725 = vmatpush3.bf16.msra.mxu0 %v724_v62  ;;  %v780_v51 = vpack.c.bf16 %v142_v49, %v141_v48  ;;  %v126_v53 = vld [vmem:[#allocation5 + $0x148] sm:$0xff]  ;;  %v144_v55 = vld [vmem:[#allocation5 + $0x1d8] sm:$0xff]  ;;  %v127_v57 = vld [vmem:[#allocation5 + $0x150] sm:$0xff] }
  0x63   :  { %726 = vmatprep.subr.bf16.mxu0 %v981_v0  ;;  %v782_v56 = vpack.c.bf16 %v126_v53, %v125_v52  ;;  %v145_v59 = vld [vmem:[#allocation5 + $0x1e0] sm:$0xff]  ;;  %v146_v60 = vld [vmem:[#allocation5 + $0x1e8] sm:$0xff]  ;;  %v147_v3 = vld [vmem:[#allocation5 + $0x1f0] sm:$0xff] }
  0x64   :  { %755 = vmatpush3.bf16.msra.mxu1 %v754_v6  ;;  %v788_v62 = vpack.c.bf16 %v146_v60, %v145_v59  ;;  %v129_v63 = vld [vmem:[#allocation5 + $0x160] sm:$0xff]  ;;  %v130_v2 = vld [vmem:[#allocation5 + $0x168] sm:$0xff]  ;;  %v148_v4 = vld [vmem:[#allocation5 + $0x1f8] sm:$0xff] }
  0x65   :  { %757 = vmatprep.subr.bf16.mxu1 %v756_v7  ;;  %v790_v5 = vpack.c.bf16 %v130_v2, %v129_v63  ;;  %v792_v6 = vpack.c.bf16 %v148_v4, %v147_v3  ;;  %v131_v7 = vld [vmem:[#allocation5 + $0x170] sm:$0xff]  ;;  %v132_v8 = vld [vmem:[#allocation5 + $0x178] sm:$0xff]  ;;  %v408_v11 = vld [vmem:[#allocation8 + $0x8] sm:$0xff] }
  0x66   :  { %728 = vmatpush3.bf16.msra.mxu0 %v727_v10  ;;  %v794_v9 = vpack.c.bf16 %v132_v8, %v131_v7  ;;  %v407_v10 = vld [vmem:[#allocation8] sm:$0xff]  ;;  %v409_v12 = vld [vmem:[#allocation8 + $0x10] sm:$0xff]  ;;  %v410_v14 = vld [vmem:[#allocation8 + $0x18] sm:$0xff] }
  0x67   :  { %729 = vmatprep.subr.bf16.mxu0 %v981_v0  ;;  %v797_v13 = vpack.c.bf16 %v408_v11, %v407_v10  ;;  %v800_v15 = vpack.c.bf16 %v410_v14, %v409_v12  ;;  %v412_v17 = vld [vmem:[#allocation8 + $0x28] sm:$0xff]  ;;  %v414_v20 = vld [vmem:[#allocation8 + $0x38] sm:$0xff]  ;;  %v417_v25 = vld [vmem:[#allocation8 + $0x50] sm:$0xff] }
  0x68   :  { %759 = vmatpush3.bf16.msra.mxu1 %v758_v16  ;;  %v411_v16 = vld [vmem:[#allocation8 + $0x20] sm:$0xff]  ;;  %v418_v26 = vld [vmem:[#allocation8 + $0x58] sm:$0xff]  ;;  %v420_v29 = vld [vmem:[#allocation8 + $0x68] sm:$0xff] }
  0x69   :  { %761 = vmatprep.subr.bf16.mxu1 %v760_v19  ;;  %v803_v18 = vpack.c.bf16 %v412_v17, %v411_v16  ;;  %v413_v19 = vld [vmem:[#allocation8 + $0x30] sm:$0xff]  ;;  %v419_v28 = vld [vmem:[#allocation8 + $0x60] sm:$0xff]  ;;  %v532_v43 = vld [vmem:[%s1155_s3] ss:$0 sm:$0xff] }
  0x6a   :  { %731 = vmatpush3.bf16.msra.mxu0 %v730_v22  ;;  %v806_v21 = vpack.c.bf16 %v414_v20, %v413_v19  ;;  %v415_v22 = vld [vmem:[#allocation8 + $0x40] sm:$0xff] }
  0x6b   :  { %765 = vmatprep.subr.bf16.mxu0 %v764_v24 }
  0x6c   :  { %763 = vmatpush3.bf16.msra.mxu1 %v762_v27  ;;  %v812_v27 = vpack.c.bf16 %v418_v26, %v417_v25 }
  0x6d   :  { %671 = vmatmul.mubr.f32.vlgmr.msra.gmra.mrb[0].mxu0 %v84_v30  ;;  %796 = vmatprep.subr.bf16.mxu1 %v981_v0  ;;  %v815_v30 = vpack.c.bf16 %v420_v29, %v419_v28 }
  0x6e   :  { %767 = vmatpush3.bf16.msra.mxu0 %v766_v31  ;;  %391 = vmatprep.mubr.f32.mxu0 %v252_v32  ;;  %v421_v31 = vld [vmem:[#allocation8 + $0x70] sm:$0xff]  ;;  %v422_v32 = vld [vmem:[#allocation8 + $0x78] sm:$0xff] }
  0x6f   :  { %322 = vmatmul.mubr.f32.vlgmr.msra.gmra.mrb[0].mxu1 %v1096_v58  ;;  %769 = vmatprep.subr.bf16.mxu0 %v768_v33  ;;  %v128_v58 = vld [vmem:[#allocation5 + $0x158] sm:$0xff]  ;;  %v818_v33 = vpack.c.bf16 %v422_v32, %v421_v31 }
  0x70   :  { %705 = vmatprep.mubr.msk.f32.mxu1 %vm982_vm0, %v983_v1  ;;  %v784_v1 = vpack.c.bf16 %v144_v55, %v143_v54  ;;  %v786_v61 = vpack.c.bf16 %v128_v58, %v127_v57  ;;  %798 = vmatpush3.bf16.msra.mxu1 %v797_v13 }
  0x71   :  { %799 = vmatprep.subr.bf16.mxu1 %v981_v0 }
  0x72   :  { %771 = vmatpush3.bf16.msra.mxu0 %v770_v38 }
  0x73   :  { %773 = vmatprep.subr.bf16.mxu0 %v772_v39 }
  0x74   :  { %801 = vmatpush3.bf16.msra.mxu1 %v800_v15 }
  0x75   :  { %802 = vmatprep.subr.bf16.mxu1 %v981_v0 }
  0x76   :  { %775 = vmatpush3.bf16.msra.mxu0 %v774_v44 }
  0x77   :  { %777 = vmatprep.subr.bf16.mxu0 %v776_v45 }
  0x78   :  { %804 = vmatpush3.bf16.msra.mxu1 %v803_v18 }
  0x79   :  { %805 = vmatprep.subr.bf16.mxu1 %v981_v0 }
  0x7a   :  { %779 = vmatpush3.bf16.msra.mxu0 %v778_v50 }
  0x7b   :  { %781 = vmatprep.subr.bf16.mxu0 %v780_v51 }
  0x7c   :  { %807 = vmatpush3.bf16.msra.mxu1 %v806_v21 }
  0x7d   :  { %808 = vmatprep.subr.bf16.mxu1 %v981_v0 }
  0x7e   :  { %783 = vmatpush3.bf16.msra.mxu0 %v782_v56 }
  0x7f   :  { %785 = vmatprep.subr.bf16.mxu0 %v784_v1 }
  0x82   :  { %787 = vmatpush3.bf16.msra.mxu0 %v786_v61 }
  0x83   :  { %789 = vmatprep.subr.bf16.mxu0 %v788_v62 }
  0x86   :  { %791 = vmatpush3.bf16.msra.mxu0 %v790_v5 }
  0x87   :  { %793 = vmatprep.subr.bf16.mxu0 %v792_v6 }
  0x8a   :  { %795 = vmatpush3.bf16.msra.mxu0 %v794_v9 }
  0x8d   :  { %392 = vmatmul.mubr.f32.vlgmr.msra.gmra.mrb[2].mxu0 %v1102_v23  ;;  %v416_v23 = vld [vmem:[#allocation8 + $0x48] sm:$0xff] }
  0x8e   :  { %v809_v24 = vpack.c.bf16 %v416_v23, %v415_v22 }
  0x90   :  { %810 = vmatpush3.bf16.msra.mxu1 %v809_v24 }
  0x91   :  { %811 = vmatprep.subr.bf16.mxu1 %v981_v0 }
  0x94   :  { %813 = vmatpush3.bf16.msra.mxu1 %v812_v27 }
  0x95   :  { %814 = vmatprep.subr.bf16.mxu1 %v981_v0 }
  0x98   :  { %816 = vmatpush3.bf16.msra.mxu1 %v815_v30 }
  0x99   :  { %817 = vmatprep.subr.bf16.mxu1 %v981_v0 }
  0x9c   :  { %819 = vmatpush3.bf16.msra.mxu1 %v818_v33 }
 0x140   :  { %v231_v34 = vpop.f32.mrb[0].mxu0 }
 0x141   :  { %v672_v35 = vpop.f32.mrb[1].mxu0 }
 0x142   :  { %v583_v36 = vpop.f32.mrb[0].mxu1 }
 0x143   :  { %v584_v37 = vpop.f32.mrb[1].mxu1 }
 0x144   :  { %v585_v38 = vadd.f32 %v584_v37, %v583_v36 }
 0x146   :  { %v324_v39 = vadd.f32 %v585_v38, %v231_v34 }
 0x160   :  { %v618_v40 = vpop.f32.mrb[2].mxu0 }
 0x161   :  { %v619_v41 = vpop.f32.mrb[3].mxu0 }
 0x162   :  { %v620_v42 = vadd.f32 %v619_v41, %v618_v40 }
 0x164   :  { %v394_v44 = vadd.f32 %v620_v42, %v324_v39 }
 0x166   :  { %v404_v45 = vadd.f32 %v532_v43, %v394_v44 }
 0x168   :  { %v405_v0 = vmax.f32 %v404_v45, 0.0 }
 0x16a   :  { %406 = vst [vmem:[#allocation11] sm:$0x3] %v405_v0  ;;  %706 = vmatmul.mubr.f32.vlgmr.msra.gmra.mrb[2].mxu1 %v405_v0 }
 0x16b   :  { %932 = shalt.err (!%p929_p8)
}
 0x16c   :  { %s933_s14 = scalar_lea.hbm %s1160_s8, 32 }
 0x16d   :  { %p934_p9 = scmp.ne.s32.totalorder %s1160_s8, %s933_s14  ;;  %p937_p10 = scmp.lt.u32.totalorder %s933_s14, %s1160_s8 }
 0x16f   :  { %p939_p11 = pnand %p937_p10, %p934_p9 }
 0x171   :  { %942 = shalt.err (!%p939_p11)
}
 0x172   :  { %520 = dma.vmem_to_hbm [thread:$0]  %s518_s10, 32, %s1160_s8, [#allocation12]   ;;  %v533_v46 = vld [vmem:[%s1158_s6] ss:$0 sm:$0xff] }
 0x173   :  { %s986_s24 = smov [#allocation10]  }
 0x174   :  { %s507_s25 = sshll.u32 %s986_s24, 4  ;;  %s508_s25 = int_to_ptr.vmem [resolvable:$true] %s507_s25 }
 0x175   :  { %s943_s26 = scalar_lea.vmem %s508_s25, 32  ;;  %p948_p13 = scmp.lt.s32.totalorder %s508_s25, %s508_s25 }
 0x176   :  { %p944_p12 = scmp.ne.s32.totalorder %s508_s25, %s943_s26  ;;  %p949_p0 = scmp.lt.s32.totalorder %s943_s26, %s943_s26 }
 0x178   :  { %p950_p1 = por %p949_p0, %p948_p13 }
 0x17a   :  { %p951_p2 = pnand %p950_p1, %p944_p12 }
 0x23d   :  { %v496_v47 = vpop.f32.mrb[2].mxu1 }
 0x23e   :  { %v497_v48 = vadd.f32 %v533_v46, %v496_v47  ;;  %v707_v49 = vpop.f32.mrb[3].mxu1 }
 0x240   :  { %500 = vst [vmem:[#allocation10] sm:$0x3] %v497_v48 }
 0x241   :  { %954 = shalt.err (!%p951_p2)
}
 0x242   :  { %s955_s29 = scalar_lea.hbm %s1159_s7, 32 }
 0x243   :  { %p956_p3 = scmp.ne.s32.totalorder %s1159_s7, %s955_s29  ;;  %p959_p4 = scmp.lt.u32.totalorder %s955_s29, %s1159_s7 }
 0x245   :  { %p961_p5 = pnand %p959_p4, %p956_p3 }
 0x247   :  { %964 = shalt.err (!%p961_p5)
}
 0x248   :  { %510 = dma.vmem_to_hbm [thread:$0]  %s508_s25, 32, %s1159_s7, [#allocation4]  }
 0x249   :  { %971 = dma.done.wait [#allocation4], 32  }
 0x24a   :  { %972 = vsyncadd [#allocation4], 4294967264 }
 0x24b   :  { %973 = dma.done.wait [#allocation12], 32  }
 0x24c   :  { %974 = vsyncadd [#allocation12], 4294967264 }
 0x24d   :  { %527 = vsyncpa [#allocation3], 1 }
 0x24e   :  { %528 = vsyncpa [#allocation6], 1 }
 0x24f   :  { %529 = vsyncpa [#allocation9], 1 }
 0x250   :  { %530 = vsyncpa [#allocation4], 1 }
 0x251   :  { %531 = vsyncpa [#allocation12], 1 }

</bundles_post_ra>
